<compile_context>
chip_gen: v6e
topology: v6e:2x2x1
jax: 0.10.0
libtpu: 0.0.40
codegen_flags: <defaults>
</compile_context>

<pallas_src>
import functools
import math

import numpy as np

import jax
import jax.numpy as jnp
from jax.experimental import pallas as pl
from jax.experimental.pallas import tpu as pltpu

LN_EPS = 1e-5  # nn.LayerNorm default


def _round_up(x: int, m: int) -> int:
    return (x + m - 1) // m * m


def _cdiv(a: int, b: int) -> int:
    return (a + b - 1) // b


def prenorm_linear_kernel(x_ref, gamma_ref, beta_ref, w_ref, b_ref, o_ref,
                          ynorm_ref, mean_ref, rstd_ref, *maybe_acc,
                          multi_k: bool):
    j = pl.program_id(1)
    k = pl.program_id(2)
    nk = pl.num_programs(2)
    D = x_ref.shape[-1]
    tk = w_ref.shape[0]

    # ---- LayerNorm statistics: once per row tile (invariant in j and k) ----
    @pl.when((j == 0) & (k == 0))
    def _stats():
        xf = x_ref[...].astype(jnp.float32)
        mean = jnp.sum(xf, axis=-1, keepdims=True) * (1.0 / D)
        centered = xf - mean                      # two-pass variance: stable
        var = jnp.sum(centered * centered, axis=-1, keepdims=True) * (1.0 / D)
        mean_ref[...] = mean
        rstd_ref[...] = jax.lax.rsqrt(var + LN_EPS)

    # ---- Fill the normalized / scaled / pre-cast row cache (only at j==0) --
    @pl.when(j == 0)
    def _fill_cache():
        if multi_k:
            start = pl.multiple_of(k * tk, 128)   # tk is a multiple of 128
            xc = x_ref[:, pl.ds(start, tk)].astype(jnp.float32)
            g = gamma_ref[:, pl.ds(start, tk)].astype(jnp.float32)
            bt = beta_ref[:, pl.ds(start, tk)].astype(jnp.float32)
            y = (xc - mean_ref[...]) * rstd_ref[...] * g + bt
            ynorm_ref[:, pl.ds(start, tk)] = y.astype(ynorm_ref.dtype)
        else:
            xc = x_ref[...].astype(jnp.float32)
            g = gamma_ref[...].astype(jnp.float32)
            bt = beta_ref[...].astype(jnp.float32)
            y = (xc - mean_ref[...]) * rstd_ref[...] * g + bt
            ynorm_ref[...] = y.astype(ynorm_ref.dtype)

    # ---- MXU: read from the cache, stream the (tk, tn) weight slab ---------
    if multi_k:
        acc_ref = maybe_acc[0]
        start = pl.multiple_of(k * tk, 128)
        y_chunk = ynorm_ref[:, pl.ds(start, tk)]
        part = jnp.dot(y_chunk, w_ref[...], preferred_element_type=jnp.float32)

        @pl.when(k == 0)
        def _init_acc():
            acc_ref[...] = part

        @pl.when(k > 0)
        def _accumulate():
            acc_ref[...] += part

        @pl.when(k == nk - 1)
        def _finalize():
            o_ref[...] = (acc_ref[...]
                          + b_ref[...].astype(jnp.float32)).astype(o_ref.dtype)
    else:
        out = jnp.dot(ynorm_ref[...], w_ref[...],
                      preferred_element_type=jnp.float32)
        o_ref[...] = (out + b_ref[...].astype(jnp.float32)).astype(o_ref.dtype)


def prenorm(x, gamma, beta, w, b, *, tm=None, tn=256, tk=512, mxu_dtype=None):
    """x: [..., D] -> [..., D_out]; LayerNorm over D then Linear(D, D_out)."""
    *lead, D = x.shape
    D_out = w.shape[1]
    M = int(math.prod(lead)) if lead else 1

    if mxu_dtype is None:
        mxu_dtype = w.dtype
    mxu_dtype = np.dtype(mxu_dtype)

    # ---- generation-aware VMEM budget -----------------------------------
    try:
        phys_vmem = int(getattr(pltpu.get_tpu_info(), "vmem_capacity_bytes",
                                128 * 1024 * 1024))
    except Exception:
        phys_vmem = 128 * 1024 * 1024            # conservative fallback

    # ---- tile selection ---------------------------------------------------
    # K tile: a multiple of 128 that divides D, else the full D (single step).
    if not (tk % 128 == 0 and D % tk == 0 and tk <= D):
        tk = D
        for cand in (512, 256, 128):
            if cand <= D and D % cand == 0:
                tk = cand
                break
    nk = D // tk
    multi_k = nk > 1

    # N tile: lane-dense multiple of 128 (unmasked vst).
    tn = min(tn, _round_up(D_out, 128))
    tn = _round_up(tn, 128)
    Dout_pad = _round_up(D_out, tn)

    # Row tile: generation-aware ceiling, then tightened to M so ragged M does
    # not waste MXU/DMA work on zero-padded rows.
    if tm is None:
        tm = 768 if phys_vmem >= 96 * 1024 * 1024 else 448   # v5e/v6e vs v7x
    tm = max(8, _round_up(min(tm, _round_up(M, 8)), 8))
    tm = min(tm, _round_up(_cdiv(M, _cdiv(M, tm)), 8))

    bpe_x = x.dtype.itemsize
    bpe_w = mxu_dtype.itemsize
    bpe_out = x.dtype.itemsize
    bpe_gb = max(gamma.dtype.itemsize, beta.dtype.itemsize)

    def _vmem_est(tm_):
        est = (2 * tm_ * D * bpe_x          # x row tile (double-buffered)
               + 2 * 2 * D * bpe_gb         # gamma + beta full vectors
               + 2 * tk * tn * bpe_w        # weight slab (double-buffered)
               + 2 * tn * bpe_w             # bias tile
               + 2 * tm_ * tn * bpe_out     # output tile
               + tm_ * D * bpe_w            # normalized-row cache
               + 2 * tm_ * 4)               # mean / rstd
        if multi_k:
            est += tm_ * tn * 4             # f32 accumulator
        return est

    while tm > 8 and _vmem_est(tm) > int(0.7 * phys_vmem):
        tm = max(8, _round_up(tm // 2, 8))

    M_pad = _round_up(M, tm)
    vmem_limit = int(min(max(int(1.5 * _vmem_est(tm)), 32 * 1024 * 1024),
                         int(0.85 * phys_vmem)))

    # ---- pad operands so the grid divides evenly --------------------------
    x2 = x.reshape(M, D)
    if M_pad != M:
        x2 = jnp.pad(x2, ((0, M_pad - M), (0, 0)))
    gamma2 = gamma.reshape(1, D)
    beta2 = beta.reshape(1, D)
    w2 = w.astype(mxu_dtype)
    b2 = b.reshape(1, D_out)
    if Dout_pad != D_out:
        w2 = jnp.pad(w2, ((0, 0), (0, Dout_pad - D_out)))
        b2 = jnp.pad(b2, ((0, 0), (0, Dout_pad - D_out)))

    grid = (M_pad // tm, Dout_pad // tn, nk)

    scratch = [pltpu.VMEM((tm, D), mxu_dtype),     # normalized-row cache
               pltpu.VMEM((tm, 1), jnp.float32),   # mean
               pltpu.VMEM((tm, 1), jnp.float32)]   # rstd
    if multi_k:
        scratch.append(pltpu.VMEM((tm, tn), jnp.float32))  # accumulator

    kernel = functools.partial(prenorm_linear_kernel, multi_k=multi_k)

    out2 = pl.pallas_call(
        kernel,
        out_shape=jax.ShapeDtypeStruct((M_pad, Dout_pad), x.dtype),
        grid_spec=pltpu.PrefetchScalarGridSpec(
            num_scalar_prefetch=0,
            grid=grid,
            in_specs=[
                # Full row tile, fetched once per row block (invariant in j, k).
                pl.BlockSpec((tm, D), lambda i, j, k: (i, 0)),
                pl.BlockSpec((1, D), lambda i, j, k: (0, 0)),    # gamma (resident)
                pl.BlockSpec((1, D), lambda i, j, k: (0, 0)),    # beta  (resident)
                pl.BlockSpec((tk, tn), lambda i, j, k: (k, j)),  # W slab
                pl.BlockSpec((1, tn), lambda i, j, k: (0, j)),   # bias tile
            ],
            out_specs=pl.BlockSpec((tm, tn), lambda i, j, k: (i, j)),
            scratch_shapes=scratch,
        ),
        compiler_params=pltpu.CompilerParams(
            # j / k carry scratch state (row cache, accumulator) -> arbitrary;
            # only the row axis i is safe to shard across v7x's TensorCores.
            dimension_semantics=("parallel", "arbitrary", "arbitrary"),
            vmem_limit_bytes=vmem_limit,
        ),
    )(x2, gamma2, beta2, w2, b2)

    return out2[:M, :D_out].reshape(*lead, D_out)


def prenorm_reference(x, gamma, beta, w, b):
    xf = x.astype(jnp.float32)
    mean = jnp.mean(xf, axis=-1, keepdims=True)
    var = jnp.mean((xf - mean) ** 2, axis=-1, keepdims=True)
    y = ((xf - mean) * jax.lax.rsqrt(var + LN_EPS) * gamma.astype(jnp.float32)
         + beta.astype(jnp.float32))
    out = jnp.dot(y, w.astype(jnp.float32),
                  precision=jax.lax.Precision.HIGHEST) + b.astype(jnp.float32)
    return out.astype(x.dtype)


def _run_case(key, B, S, D, D_out, **prenorm_kwargs):
    kx, kweight, kbias = jax.random.split(key, 3)
    x = jax.random.normal(kx, (B, S, D), dtype=jnp.float32)
    gamma = 1.0 + 0.1 * jax.random.normal(jax.random.fold_in(key, 7), (D,),
                                          dtype=jnp.float32)
    beta = 0.1 * jax.random.normal(jax.random.fold_in(key, 11), (D,),
                                   dtype=jnp.float32)
    bound = 1.0 / math.sqrt(D)
    w = jax.random.uniform(kweight, (D, D_out), jnp.float32, -bound, bound)
    b = jax.random.uniform(kbias, (D_out,), jnp.float32, -bound, bound)

    out = jax.block_until_ready(prenorm(x, gamma, beta, w, b, **prenorm_kwargs))
    ref = prenorm_reference(x, gamma, beta, w, b)
    assert out.shape == (B, S, D_out)
    err = float(jnp.max(jnp.abs(out - ref)))
    assert jnp.allclose(out, ref, atol=2e-3, rtol=2e-3), f"max abs err {err}"


if __name__ == "__main__":
    # TODO(synk): PreNorm wraps an arbitrary `fn`; this kernel fuses LayerNorm
    # with the canonical fn = nn.Linear(dim, dim_out) case.
    key = jax.random.PRNGKey(0)
    k1, k2, k3 = jax.random.split(key, 3)

    # Small shape from the module spec (single tile, tk == D path).
    _run_case(k1, B=2, S=8, D=32, D_out=32)

    # Ragged M (adaptive tm -> no row padding) + lane-dense N padding (192->256).
    _run_case(k2, B=2, S=136, D=256, D_out=192)

    # Multi-K accumulation (tk=256 over D=512) + multi-N reuse of the
    # normalized-row cache (D_out=512 -> two 256-wide N tiles).
    _run_case(k3, B=2, S=36, D=512, D_out=512, tk=256)

    print("KERNEL_OK")
</pallas_src>

<mosaic_0001>
module attributes {stable_mosaic.version = 11 : i64} {
  func.func @prenorm_linear_kernel(%arg0: i32, %arg1: i32, %arg2: i32, %arg3: memref<16x32xf32, #tpu.memory_space<vmem>>, %arg4: memref<1x32xf32, #tpu.memory_space<vmem>>, %arg5: memref<1x32xf32, #tpu.memory_space<vmem>>, %arg6: memref<32x128xf32, #tpu.memory_space<vmem>>, %arg7: memref<1x128xf32, #tpu.memory_space<vmem>>, %arg8: memref<16x128xf32, #tpu.memory_space<vmem>>, %arg9: memref<16x32xf32, #tpu.memory_space<vmem>>, %arg10: memref<16x1xf32, #tpu.memory_space<vmem>>, %arg11: memref<16x1xf32, #tpu.memory_space<vmem>>) attributes {dimension_semantics = [#tpu.dimension_semantics<parallel>, #tpu.dimension_semantics<arbitrary>, #tpu.dimension_semantics<arbitrary>], iteration_bounds = array<i64: 1, 1, 1>, scalar_prefetch = 0 : i64, scratch_operands = 3 : i64, tpu.core_type = #tpu.core_type<tc>, window_params = [{transform_indices = @transform_0, window_bounds = array<i64: 16, 32>}, {pipeline_mode = #tpu.pipeline_mode<synchronous>, transform_indices = @transform_1, window_bounds = array<i64: 1, 32>}, {pipeline_mode = #tpu.pipeline_mode<synchronous>, transform_indices = @transform_2, window_bounds = array<i64: 1, 32>}, {transform_indices = @transform_3, window_bounds = array<i64: 32, 128>}, {transform_indices = @transform_4, window_bounds = array<i64: 1, 128>}, {transform_indices = @transform_5, window_bounds = array<i64: 16, 128>}]} {
    %c0_i32 = arith.constant 0 : i32
    %0 = arith.cmpi eq, %arg1, %c0_i32 : i32
    %c0_i32_0 = arith.constant 0 : i32
    %1 = arith.cmpi eq, %arg2, %c0_i32_0 : i32
    %2 = arith.andi %0, %1 : i1
    %3 = arith.extui %2 : i1 to i32
    %c0_i32_1 = arith.constant 0 : i32
    %4 = arith.cmpi ne, %3, %c0_i32_1 : i32
    scf.if %4 {
      %c0_11 = arith.constant 0 : index
      %c0_12 = arith.constant 0 : index
      %15 = vector.load %arg3[%c0_11, %c0_12] : memref<16x32xf32, #tpu.memory_space<vmem>>, vector<16x32xf32>
      %cst_13 = arith.constant dense<0.000000e+00> : vector<16xf32>
      %16 = vector.multi_reduction <add>, %15, %cst_13 [1] : vector<16x32xf32> to vector<16xf32>
      %17 = vector.shape_cast %16 : vector<16xf32> to vector<16x1xf32>
      %cst_14 = arith.constant 3.125000e-02 : f32
      %18 = vector.broadcast %cst_14 : f32 to vector<16x1xf32>
      %19 = arith.mulf %17, %18 : vector<16x1xf32>
      %20 = vector.broadcast %19 : vector<16x1xf32> to vector<16x32xf32>
      %21 = arith.subf %15, %20 : vector<16x32xf32>
      %22 = arith.mulf %21, %21 : vector<16x32xf32>
      %cst_15 = arith.constant dense<0.000000e+00> : vector<16xf32>
      %23 = vector.multi_reduction <add>, %22, %cst_15 [1] : vector<16x32xf32> to vector<16xf32>
      %24 = vector.shape_cast %23 : vector<16xf32> to vector<16x1xf32>
      %cst_16 = arith.constant 3.125000e-02 : f32
      %25 = vector.broadcast %cst_16 : f32 to vector<16x1xf32>
      %26 = arith.mulf %24, %25 : vector<16x1xf32>
      %c0_17 = arith.constant 0 : index
      %c0_18 = arith.constant 0 : index
      %27 = vector.load %arg10[%c0_17, %c0_18] : memref<16x1xf32, #tpu.memory_space<vmem>>, vector<16x1xf32>
      tpu.vector_store %arg10[%c0_17, %c0_18], %19 {strides = array<i32>} : memref<16x1xf32, #tpu.memory_space<vmem>>, vector<16x1xf32>,
      %cst_19 = arith.constant 9.99999974E-6 : f32
      %28 = vector.broadcast %cst_19 : f32 to vector<16x1xf32>
      %29 = arith.addf %26, %28 : vector<16x1xf32>
      %30 = math.rsqrt %29 : vector<16x1xf32>
      %c0_20 = arith.constant 0 : index
      %c0_21 = arith.constant 0 : index
      %31 = vector.load %arg11[%c0_20, %c0_21] : memref<16x1xf32, #tpu.memory_space<vmem>>, vector<16x1xf32>
      tpu.vector_store %arg11[%c0_20, %c0_21], %30 {strides = array<i32>} : memref<16x1xf32, #tpu.memory_space<vmem>>, vector<16x1xf32>,
    } else {
    }
    %c0_i32_2 = arith.constant 0 : i32
    %5 = arith.cmpi eq, %arg1, %c0_i32_2 : i32
    %6 = arith.extui %5 : i1 to i32
    %c0_i32_3 = arith.constant 0 : i32
    %7 = arith.cmpi ne, %6, %c0_i32_3 : i32
    scf.if %7 {
      %c0_11 = arith.constant 0 : index
      %c0_12 = arith.constant 0 : index
      %15 = vector.load %arg3[%c0_11, %c0_12] : memref<16x32xf32, #tpu.memory_space<vmem>>, vector<16x32xf32>
      %c0_13 = arith.constant 0 : index
      %c0_14 = arith.constant 0 : index
      %16 = vector.load %arg4[%c0_13, %c0_14] : memref<1x32xf32, #tpu.memory_space<vmem>>, vector<1x32xf32>
      %c0_15 = arith.constant 0 : index
      %c0_16 = arith.constant 0 : index
      %17 = vector.load %arg5[%c0_15, %c0_16] : memref<1x32xf32, #tpu.memory_space<vmem>>, vector<1x32xf32>
      %c0_17 = arith.constant 0 : index
      %c0_18 = arith.constant 0 : index
      %18 = vector.load %arg10[%c0_17, %c0_18] : memref<16x1xf32, #tpu.memory_space<vmem>>, vector<16x1xf32>
      %19 = vector.broadcast %18 : vector<16x1xf32> to vector<16x32xf32>
      %20 = arith.subf %15, %19 : vector<16x32xf32>
      %c0_19 = arith.constant 0 : index
      %c0_20 = arith.constant 0 : index
      %21 = vector.load %arg11[%c0_19, %c0_20] : memref<16x1xf32, #tpu.memory_space<vmem>>, vector<16x1xf32>
      %22 = vector.broadcast %21 : vector<16x1xf32> to vector<16x32xf32>
      %23 = arith.mulf %20, %22 : vector<16x32xf32>
      %24 = vector.broadcast %16 : vector<1x32xf32> to vector<16x32xf32>
      %25 = arith.mulf %23, %24 : vector<16x32xf32>
      %26 = vector.broadcast %17 : vector<1x32xf32> to vector<16x32xf32>
      %27 = arith.addf %25, %26 : vector<16x32xf32>
      %c0_21 = arith.constant 0 : index
      %c0_22 = arith.constant 0 : index
      %28 = vector.load %arg9[%c0_21, %c0_22] : memref<16x32xf32, #tpu.memory_space<vmem>>, vector<16x32xf32>
      tpu.vector_store %arg9[%c0_21, %c0_22], %27 {strides = array<i32>} : memref<16x32xf32, #tpu.memory_space<vmem>>, vector<16x32xf32>,
    } else {
    }
    %c0 = arith.constant 0 : index
    %c0_4 = arith.constant 0 : index
    %8 = vector.load %arg9[%c0, %c0_4] : memref<16x32xf32, #tpu.memory_space<vmem>>, vector<16x32xf32>
    %c0_5 = arith.constant 0 : index
    %c0_6 = arith.constant 0 : index
    %9 = vector.load %arg6[%c0_5, %c0_6] : memref<32x128xf32, #tpu.memory_space<vmem>>, vector<32x128xf32>
    %cst = arith.constant dense<0.000000e+00> : vector<16x128xf32>
    %10 = tpu.matmul %8, %9, %cst {dimension_numbers = #tpu.dot_dimension_numbers<[1], [0], [0], [1], [0, 0, 1, 1], [], []>} : vector<16x32xf32>, vector<32x128xf32>, vector<16x128xf32> -> vector<16x128xf32>
    %c0_7 = arith.constant 0 : index
    %c0_8 = arith.constant 0 : index
    %11 = vector.load %arg7[%c0_7, %c0_8] : memref<1x128xf32, #tpu.memory_space<vmem>>, vector<1x128xf32>
    %12 = vector.broadcast %11 : vector<1x128xf32> to vector<16x128xf32>
    %13 = arith.addf %10, %12 : vector<16x128xf32>
    %c0_9 = arith.constant 0 : index
    %c0_10 = arith.constant 0 : index
    %14 = vector.load %arg8[%c0_9, %c0_10] : memref<16x128xf32, #tpu.memory_space<vmem>>, vector<16x128xf32>
    tpu.vector_store %arg8[%c0_9, %c0_10], %13 {strides = array<i32>} : memref<16x128xf32, #tpu.memory_space<vmem>>, vector<16x128xf32>,
    return
  }
  func.func @transform_0(%arg0: i32, %arg1: i32, %arg2: i32) -> (i32, i32) {
    %c0_i32 = arith.constant 0 : i32
    %c0_i32_0 = arith.constant 0 : i32
    return %arg0, %c0_i32 : i32, i32
  }
  func.func @transform_1(%arg0: i32, %arg1: i32, %arg2: i32) -> (i32, i32) {
    %c0_i32 = arith.constant 0 : i32
    %c0_i32_0 = arith.constant 0 : i32
    %c0_i32_1 = arith.constant 0 : i32
    return %c0_i32, %c0_i32_0 : i32, i32
  }
  func.func @transform_2(%arg0: i32, %arg1: i32, %arg2: i32) -> (i32, i32) {
    %c0_i32 = arith.constant 0 : i32
    %c0_i32_0 = arith.constant 0 : i32
    %c0_i32_1 = arith.constant 0 : i32
    return %c0_i32, %c0_i32_0 : i32, i32
  }
  func.func @transform_3(%arg0: i32, %arg1: i32, %arg2: i32) -> (i32, i32) {
    %c0_i32 = arith.constant 0 : i32
    return %arg2, %arg1 : i32, i32
  }
  func.func @transform_4(%arg0: i32, %arg1: i32, %arg2: i32) -> (i32, i32) {
    %c0_i32 = arith.constant 0 : i32
    %c0_i32_0 = arith.constant 0 : i32
    return %c0_i32, %arg1 : i32, i32
  }
  func.func @transform_5(%arg0: i32, %arg1: i32, %arg2: i32) -> (i32, i32) {
    %c0_i32 = arith.constant 0 : i32
    return %arg0, %arg1 : i32, i32
  }
}

</mosaic_0001>

<bundles_post_ra>
// kernel: tpu_custom_call.1
= control target key start
LH: loop header
LB: loop body
LE: loop exit
PB: predicated region body
PF: predicated region fallthrough
CT: control target
= control target key end

     0   :  { %10 = vsyncpa [#allocation6], 0  ;;  %s436_s0 = inlined_call_operand.hbm [shape: f32[16,32], index: 0, kind: input, shape index: {}]   ;;  %s437_s1 = inlined_call_operand.vmem [shape: f32[1,32], index: 1, kind: input, shape index: {}]   ;;  %s438_s2 = inlined_call_operand.vmem [shape: f32[1,32], index: 2, kind: input, shape index: {}]   ;;  %s439_s3 = inlined_call_operand.hbm [shape: f32[32,128], index: 3, kind: input, shape index: {}]   ;;  %s440_s4 = inlined_call_operand.vmem [shape: f32[1,128], index: 4, kind: input, shape index: {}]   ;;  %s441_s5 = inlined_call_operand.hbm [shape: f32[16,128], index: 5, kind: output, shape index: {}]  }
   0x1   :  { %11 = vsyncpa [#allocation9], 0 }
   0x2   :  { %12 = vsyncpa [#allocation7], 0  ;;  %s356_s18 = smov [#allocation5]  }
   0x3   :  { %s18_s19 = sshll.u32 %s356_s18, 4  ;;  %s19_s19 = int_to_ptr.vmem [resolvable:$true] %s18_s19 }
   0x4   :  { %s298_s20 = scalar_lea.vmem %s19_s19, 256  ;;  %p303_p1 = scmp.lt.s32.totalorder %s19_s19, %s19_s19 }
   0x5   :  { %p299_p0 = scmp.ne.s32.totalorder %s19_s19, %s298_s20  ;;  %p304_p2 = scmp.lt.s32.totalorder %s298_s20, %s298_s20 }
   0x7   :  { %p305_p3 = por %p304_p2, %p303_p1 }
   0x9   :  { %p306_p4 = pnand %p305_p3, %p299_p0 }
   0xb   :  { %309 = shalt.err (!%p306_p4)
}
   0xc   :  { %s357_s21 = smov 128   ;;  %s358_s22 = smov 8  }
   0xd   :  { %24 = dma.hbm_to_vmem [thread:$0]  %s436_s0, 256, %s19_s19, [#allocation6], %s357_s21, %s357_s21, %s358_s22  }
   0xe   :  { %s359_s25 = smov [#allocation8]  }
   0xf   :  { %s34_s26 = sshll.u32 %s359_s25, 4  ;;  %s35_s26 = int_to_ptr.vmem [resolvable:$true] %s34_s26 }
  0x10   :  { %s318_s27 = scalar_lea.vmem %s35_s26, 512  ;;  %p323_p6 = scmp.lt.s32.totalorder %s35_s26, %s35_s26 }
  0x11   :  { %p319_p5 = scmp.ne.s32.totalorder %s35_s26, %s318_s27  ;;  %p324_p7 = scmp.lt.s32.totalorder %s318_s27, %s318_s27 }
  0x13   :  { %p325_p8 = por %p324_p7, %p323_p6 }
  0x15   :  { %p326_p9 = pnand %p325_p8, %p319_p5 }
  0x17   :  { %329 = shalt.err (!%p326_p9)
}
  0x18   :  { %40 = dma.hbm_to_vmem [thread:$0]  %s439_s3, 512, %s35_s26, [#allocation9], %s357_s21, %s357_s21, %s358_s22  }
  0x19   :  { %350 = dma.done.wait [#allocation6], 256  }
  0x1a   :  { %351 = vsyncadd [#allocation6], 4294967040 }
  0x1b   :  { %352 = dma.done.wait [#allocation9], 512  }
  0x1c   :  { %353 = vsyncadd [#allocation9], 4294966784  ;;  %vm57_vm0 = vcmask 261120   ;;  %v55_v0 = vld [vmem:[#allocation5] sm:$0xff]  ;;  %v404_v1 = vld [vmem:[#allocation5 + $0x8] sm:$0xff]  ;;  %v360_v4 = vmov 0  }
  0x1d   :  { %v58_v2 = vsel %vm57_vm0, %v55_v0, 0.0  ;;  %v61_v3 = vsel %vm57_vm0, %v404_v1, 0.0  ;;  %284 = vset.pattern.permute.xlu0 %v360_v4  ;;  %285 = vset.pattern.permute.xlu1 %v360_v4  ;;  %vm78_vm1 = vcmask 7168   ;;  %v146_v27 = vld [vmem:[#allocation8 + $0x18] sm:$0xff]  ;;  %v145_v28 = vld [vmem:[#allocation8 + $0x10] sm:$0xff]  ;;  %v144_v29 = vld [vmem:[#allocation8 + $0x8] sm:$0xff] }
  0x1e   :  { %59 = vadd.xlane.f32.xlu0 %v58_v2  ;;  %267 = vmatprep.subr.mxu0 %v146_v27  ;;  %v143_v30 = vld [vmem:[#allocation8] sm:$0xff]  ;;  %s361_s7 = smov [#allocation10]  }
  0x1f   :  { %268 = vmatpush3.msra.mxu0 %v146_v27  ;;  %v256_v34 = vld [vmem:[%s437_s1] ss:$0 sm:$0xff]  ;;  %s243_s8 = sshll.u32 %s361_s7, 4  ;;  %s244_s8 = int_to_ptr.vmem [resolvable:$true] %s243_s8 }
  0x20   :  { %269 = vmatprep.subr.mxu0 %v145_v28  ;;  %v257_v37 = vld [vmem:[%s438_s2] ss:$0 sm:$0xff]  ;;  %s330_s9 = scalar_lea.vmem %s244_s8, 256  ;;  %p335_p11 = scmp.lt.s32.totalorder %s244_s8, %s244_s8 }
  0x21   :  { %270 = vmatpush3.msra.mxu0 %v145_v28  ;;  %v258_v47 = vld [vmem:[%s440_s4] ss:$0 sm:$0xff]  ;;  %p331_p10 = scmp.ne.s32.totalorder %s244_s8, %s330_s9  ;;  %p336_p12 = scmp.lt.s32.totalorder %s330_s9, %s330_s9 }
  0x22   :  { %62 = vadd.xlane.f32.xlu0 %v61_v3  ;;  %271 = vmatprep.subr.mxu0 %v144_v29 }
  0x23   :  { %272 = vmatpush3.msra.mxu0 %v144_v29  ;;  %p337_p13 = por %p336_p12, %p335_p11 }
  0x24   :  { %273 = vmatprep.subr.mxu0 %v143_v30 }
  0x25   :  { %274 = vmatpush3.msra.mxu0 %v143_v30  ;;  %p338_p0 = pnand %p337_p13, %p331_p10 }
  0xa7   :  { %v60_v5 = vpop.xlane.xlu0 %59 }
  0xa8   :  { %v64_v6 = vmul.f32 0.03125, %v60_v5 }
  0xaa   :  { %79 = vst.msk [vmem:[#allocation3] sm:$0xff] %vm78_vm1, %v64_v6  ;;  %v66_v7 = vsub.f32 %v55_v0, %v64_v6 }
  0xab   :  { %v63_v8 = vpop.xlane.xlu0 %62 }
  0xac   :  { %v65_v9 = vmul.f32 0.03125, %v63_v8  ;;  %v68_v10 = vmul.f32 %v66_v7, %v66_v7 }
  0xae   :  { %v67_v11 = vsub.f32 %v404_v1, %v65_v9  ;;  %80 = vst.msk [vmem:[#allocation3 + $0x8] sm:$0xff] %vm78_vm1, %v65_v9  ;;  %v70_v12 = vsel %vm57_vm0, %v68_v10, 0.0 }
  0xaf   :  { %71 = vadd.xlane.f32.xlu1 %v70_v12 }
  0xb0   :  { %v69_v13 = vmul.f32 %v67_v11, %v67_v11 }
  0xb1   :  { %v94_v14 = vld [vmem:[#allocation3] sm:$0xff] }
  0xb2   :  { %98 = vperm.xlu0 %284, %v94_v14   ;;  %v73_v15 = vsel %vm57_vm0, %v69_v13, 0.0 }
  0xb3   :  { %74 = vadd.xlane.f32.xlu1 %v73_v15 }
  0xb5   :  { %v95_v16 = vld [vmem:[#allocation3 + $0x8] sm:$0xff] }
  0xc4   :  { %103 = vperm.xlu1 %285, %v95_v16  }
 0x12d   :  { %v99_v31 = vpop.permute.xlu0 %98 }
 0x12e   :  { %v106_v33 = vsub.f32 %v55_v0, %v99_v31 }
 0x138   :  { %v72_v17 = vpop.xlane.xlu1 %71 }
 0x139   :  { %v76_v18 = vmul.f32 0.03125, %v72_v17 }
 0x13b   :  { %v81_v19 = vadd.f32 1e-05, %v76_v18 }
 0x13c   :  { %v75_v20 = vpop.xlane.xlu1 %74 }
 0x13d   :  { %286 = vrsqrt.f32 %v81_v19  ;;  %v77_v21 = vmul.f32 0.03125, %v75_v20 }
 0x13f   :  { %v82_v22 = vadd.f32 1e-05, %v77_v21 }
 0x140   :  { %v104_v32 = vpop.permute.xlu1 %103 }
 0x141   :  { %288 = vrsqrt.f32 %v82_v22  ;;  %v107_v38 = vsub.f32 %v404_v1, %v104_v32 }
 0x14a   :  { %v287_v23 = vpop.eup %286 }
 0x14b   :  { %85 = vst.msk [vmem:[#allocation4] sm:$0xff] %vm78_vm1, %v287_v23 }
 0x14e   :  { %v289_v24 = vpop.eup %288 }
 0x14f   :  { %86 = vst.msk [vmem:[#allocation4 + $0x8] sm:$0xff] %vm78_vm1, %v289_v24 }
 0x152   :  { %v108_v25 = vld [vmem:[#allocation4] sm:$0xff] }
 0x153   :  { %112 = vperm.xlu1 %285, %v108_v25  }
 0x156   :  { %v109_v26 = vld [vmem:[#allocation4 + $0x8] sm:$0xff] }
 0x157   :  { %117 = vperm.xlu1 %285, %v109_v26  }
 0x1ce   :  { %v113_v35 = vpop.permute.xlu1 %112 }
 0x1cf   :  { %v120_v36 = vmul.f32 %v113_v35, %v106_v33 }
 0x1d1   :  { %v128_v39 = vmul.f32 %v256_v34, %v120_v36 }
 0x1d2   :  { %v118_v40 = vpop.permute.xlu1 %117 }
 0x1d3   :  { %v136_v41 = vadd.f32 %v257_v37, %v128_v39  ;;  %v121_v42 = vmul.f32 %v118_v40, %v107_v38 }
 0x1d5   :  { %139 = vst.msk [vmem:[#allocation2] sm:$0xff] %vm57_vm0, %v136_v41  ;;  %v129_v43 = vmul.f32 %v256_v34, %v121_v42 }
 0x1d7   :  { %v137_v44 = vadd.f32 %v257_v37, %v129_v43 }
 0x1d9   :  { %140 = vst.msk [vmem:[#allocation2 + $0x8] sm:$0xff] %vm57_vm0, %v137_v44 }
 0x1dc   :  { %v141_v45 = vld [vmem:[#allocation2] sm:$0xff] }
 0x1dd   :  { %275 = vmatprep.mubr.msk.f32.mxu0 %vm57_vm0, %v141_v45 }
 0x1e0   :  { %v142_v46 = vld [vmem:[#allocation2 + $0x8] sm:$0xff] }
 0x1e1   :  { %276 = vmatmul.mubr.msk.f32.vlgmr.msra.gmra.mxu0 %vm57_vm0, %v142_v46 }
 0x2a1   :  { %v277_v48 = vpop.f32.mrf.mxu0 }
 0x2a2   :  { %v233_v49 = vadd.f32 %v277_v48, %v258_v47 }
 0x2a3   :  { %v227_v50 = vpop.f32.mrf.mxu0 }
 0x2a4   :  { %237 = vst [vmem:[#allocation10 + $0x8] sm:$0xff] %v233_v49  ;;  %v228_v51 = vadd.f32 %v258_v47, %v227_v50 }
 0x2a6   :  { %236 = vst [vmem:[#allocation10] sm:$0xff] %v228_v51 }
 0x2a7   :  { %341 = shalt.err (!%p338_p0)
}
 0x2a8   :  { %249 = dma.vmem_to_hbm [thread:$0]  %s244_s8, 256, %s441_s5, [#allocation7], %s357_s21, %s357_s21, %s358_s22  }
 0x2a9   :  { %354 = dma.done.wait [#allocation7], 256  }
 0x2aa   :  { %355 = vsyncadd [#allocation7], 4294967040 }
 0x2ab   :  { %253 = vsyncpa [#allocation6], 1 }
 0x2ac   :  { %254 = vsyncpa [#allocation9], 1 }
 0x2ad   :  { %255 = vsyncpa [#allocation7], 1 }

</bundles_post_ra>
